<compile_context>
chip_gen: v6e
topology: v6e:2x2x1
jax: 0.10.0
libtpu: 0.0.40
codegen_flags: <defaults>
</compile_context>

<pallas_src>
import functools

import numpy as np
import jax
import jax.numpy as jnp
from jax import lax
from jax.experimental import pallas as pl
from jax.experimental.pallas import tpu as pltpu


# ----------------------------- parameter setup (host) ------------------------------
def _rampfilter(size):
    n = np.concatenate((np.arange(1, size / 2 + 1, 2, dtype=int),
                        np.arange(size / 2 - 1, 0, -2, dtype=int)))
    f = np.zeros(size)
    f[0] = 0.25
    f[1::2] = -1.0 / (np.pi * n) ** 2
    return 2.0 * np.real(np.fft.fft(f))                      # (size,), real, even-symmetric


def _make_filter_matrix_T(det_count):
    """Matrix F^T such that (x @ F^T) == real(ifft(fft(pad(x)) * ramp))[:det_count]."""
    proj_padded = max(64, int(2 ** np.ceil(np.log2(2 * det_count))))
    ramp = _rampfilter(proj_padded)
    h = np.real(np.fft.ifft(ramp))                           # real impulse response (P,)
    k = np.arange(det_count)[:, None]
    m = np.arange(det_count)[None, :]
    fmat = h[(k - m) % proj_padded]                          # y[k] = sum_m fmat[k,m] x[m]
    return fmat.T.astype(np.float64)                         # (D, D), used as x @ fmatT


# ----------------------------- hardware / tile selection ---------------------------
def _vmem_capacity_bytes():
    """Per-core VMEM capacity; conservative (64 MiB) when the part is unknown."""
    try:
        return int(pltpu.get_tpu_info().vmem_capacity_bytes)
    except Exception:
        try:
            kind = jax.devices()[0].device_kind.lower()
        except Exception:
            kind = ""
        if any(v in kind for v in ("v4", "v5", "v6")):
            return 128 << 20
        return 64 << 20                                       # v7x and unknown parts


def _is_v5():
    try:
        return "v5" in jax.devices()[0].device_kind.lower()
    except Exception:
        return False


def _pick_tile_a(n_angles, target=16):
    """Largest divisor of n_angles <= target (angles processed per grid step)."""
    for t in range(min(target, n_angles), 0, -1):
        if n_angles % t == 0:
            return t
    return 1


def _pick_hw_tile(hw, target):
    """Largest 128-aligned pixel tile <= target dividing hw; prefer an EVEN tile
    count so both v7x TensorCores get work on the parallel axis."""
    target = max(128, min(target, hw))
    if hw % 128 != 0:
        return hw                                             # odd tiny images: one block
    best = None
    t = (target // 128) * 128
    while t >= 128:
        if hw % t == 0:
            if (hw // t) % 2 == 0:
                return t
            if best is None:
                best = t
        t -= 128
    return best if best is not None else hw


def _pick_row_tile(rows, cap=512):
    if rows <= cap:
        return rows
    for t in range(cap, 0, -1):
        if rows % t == 0 and t % 8 == 0:
            return t
    return rows


# ------------------------- stage 1: ramp-filter Pallas kernel ------------------------
def _filter_kernel(x_ref, fT_ref, o_ref):
    # (row_tile, D) @ (D, D) — batch*angle folded into M for a proper MXU shape.
    o_ref[...] = jnp.dot(x_ref[...], fT_ref[...],
                         preferred_element_type=jnp.float32).astype(o_ref.dtype)


def _apply_filter(rows, fmatT, row_tile, out_dtype):
    n_rows, det = rows.shape
    return pl.pallas_call(
        _filter_kernel,
        out_shape=jax.ShapeDtypeStruct((n_rows, det), out_dtype),
        grid_spec=pltpu.PrefetchScalarGridSpec(
            num_scalar_prefetch=0,
            grid=(n_rows // row_tile,),
            in_specs=[pl.BlockSpec((row_tile, det), lambda r: (r, 0)),
                      pl.BlockSpec((det, det), lambda r: (0, 0))],
            out_specs=pl.BlockSpec((row_tile, det), lambda r: (r, 0)),
        ),
        compiler_params=pltpu.CompilerParams(dimension_semantics=("parallel",)),
    )(rows, fmatT)


# ------------------------ stage 2: backprojection Pallas kernel ----------------------
def _backproject_kernel(trig_ref, sf_ref, out_ref, *,
                        det_count, image_size, tile_a, hw_tile,
                        sf_is_resident, w_dtype):
    h = pl.program_id(0)          # pixel-tile index   (parallel)
    k = pl.program_id(1)          # angle-tile index   (arbitrary / reduction, last)

    @pl.when(k == 0)
    def _():
        out_ref[...] = jnp.zeros_like(out_ref)

    # ---- pixel coordinates of this HW tile, generated in-kernel (no HBM input) ----
    p = (lax.broadcasted_iota(jnp.int32, (1, hw_tile), 1)
         + h * hw_tile).astype(jnp.float32)                   # flat pixel index
    w_img = jnp.float32(image_size)
    row = jnp.floor(p / w_img)                                # image row i
    col = p - row * w_img                                     # image col j
    half = jnp.float32(0.5 * (det_count - 1))
    g_step = jnp.float32((det_count - 1) / (image_size - 1))
    gxs = col * g_step - half                                 # grid_x * 0.5*(D-1)  (1, hw)
    gys = row * g_step - half                                 # grid_y * 0.5*(D-1)  (1, hw)

    d_col = lax.broadcasted_iota(jnp.int32, (det_count, 1), 0).astype(jnp.float32)

    # ---- per-angle accumulation (no stacked weight matrix, no concat) -------------
    def body(a, carry):
        ga = k * tile_a + a
        c = trig_ref[0, ga]                                   # cos(theta_a) from SMEM
        s = trig_ref[1, ga]                                   # sin(theta_a) from SMEM
        u_a = gxs * c - gys * s + half                        # detector coord (1, hw), f32
        # grid_sample(bilinear, zeros padding, align_corners=True) hat weights.
        # Subtract in f32 (values up to ~D), then abs/1-x/max in the MXU dtype
        # (bf16 on bf16-native VPUs; f32 on v5 where bf16 ALUs don't exist).
        diff = (u_a - d_col).astype(w_dtype)                  # (D, hw_tile)
        w_a = jnp.maximum(0.0, 1.0 - jnp.abs(diff))           # (D, hw_tile), w_dtype
        sf_a = sf_ref[ga] if sf_is_resident else sf_ref[a]    # (bsz, D), w_dtype
        out_ref[...] += jnp.dot(sf_a, w_a, preferred_element_type=jnp.float32)
        return carry

    lax.fori_loop(0, tile_a, body, 0, unroll=True)


# ------------------------------------- wrapper --------------------------------------
def fbp_forward(x, *, n_angles, image_size, circle=False, filtered=True,
                tile_a=None, hw_tile=None, compute_dtype=None):
    """x: (bsz, 1, det_count, n_angles) sinogram -> (bsz, 1, H, W) reconstruction."""
    bsz, _, det_count, a_total = x.shape
    assert det_count == image_size and a_total == n_angles
    hw = image_size * image_size

    is_v5 = _is_v5()
    vmem_cap = _vmem_capacity_bytes()
    if compute_dtype is None:
        # bf16 MXU/VPU operands on bf16-native parts; pure f32 on v5 (no bf16 ALUs,
        # so the casts would just be extra work on the saturated VALU path).
        compute_dtype = jnp.float32 if is_v5 else jnp.bfloat16
    itemsize = jnp.dtype(compute_dtype).itemsize

    if tile_a is None:
        tile_a = _pick_tile_a(n_angles)
    assert n_angles % tile_a == 0

    # ------------------------------ VMEM planning ---------------------------------
    budget = int(0.70 * vmem_cap)                             # leave real headroom
    sf_bytes = n_angles * bsz * det_count * itemsize
    sf_resident = (2 * sf_bytes) <= (budget // 3)             # keep whole sino in VMEM
    sf_alloc = 2 * (sf_bytes if sf_resident
                    else tile_a * bsz * det_count * itemsize)
    # per-pixel-column cost: double-buffered f32 output + per-angle f32 diff + hat temps
    per_hwt = 2 * bsz * 4 + int(det_count * (4 + 3 * itemsize))
    if hw_tile is None:
        hwt_budget = max(128, (budget - sf_alloc - (2 << 20)) // per_hwt)
        hw_tile = _pick_hw_tile(hw, min(int(hwt_budget), 8192))
    assert hw % hw_tile == 0 and (hw_tile % 128 == 0 or hw_tile == hw)

    step_size = image_size / det_count
    scale = np.pi / (2.0 * n_angles) / step_size              # folded into the filter

    # --------- stage 1: ramp filtering as one (A*bsz, D) @ (D, D) matmul ----------
    # Row order is angle-major so the output reshapes directly to (A, bsz, D).
    sino_rows = jnp.transpose(x[:, 0].astype(jnp.float32), (2, 0, 1)) \
                   .reshape(n_angles * bsz, det_count)
    if filtered:
        fmatT = _make_filter_matrix_T(det_count) * scale
        filt_op_dtype = jnp.bfloat16 if is_v5 else jnp.float32   # v5 MXU is slow at f32
        sf_rows = _apply_filter(sino_rows.astype(filt_op_dtype),
                                jnp.asarray(fmatT.astype(np.float32)).astype(filt_op_dtype),
                                _pick_row_tile(n_angles * bsz),
                                compute_dtype)
    else:
        sf_rows = (sino_rows * np.float32(scale)).astype(compute_dtype)
    sf = sf_rows.reshape(n_angles, bsz, det_count)            # (A, bsz, D), compute dtype

    # ----------------------------- stage 2: backprojection ------------------------
    thetas = np.linspace(0.0, np.pi - np.pi / n_angles, n_angles)
    trig = np.stack([np.cos(thetas), np.sin(thetas)]).astype(np.float32)   # (2, A) -> SMEM

    kernel = functools.partial(_backproject_kernel, det_count=det_count,
                               image_size=image_size, tile_a=tile_a, hw_tile=hw_tile,
                               sf_is_resident=sf_resident, w_dtype=compute_dtype)

    if sf_resident:
        # Constant block index => the filtered sinogram is DMA'd into VMEM once and
        # stays resident for the whole grid (no per-pixel-tile re-reads).
        sf_spec = pl.BlockSpec((n_angles, bsz, det_count), lambda h, k: (0, 0, 0))
    else:
        sf_spec = pl.BlockSpec((tile_a, bsz, det_count), lambda h, k: (k, 0, 0))

    vmem_limit = int(min(0.85 * vmem_cap,
                         max(32 << 20, sf_alloc + per_hwt * hw_tile + (8 << 20))))

    cost = pl.CostEstimate(
        flops=int(2 * bsz * n_angles * det_count * hw + 5 * n_angles * det_count * hw),
        transcendentals=0,
        bytes_accessed=int(sf_bytes * (1 if sf_resident else hw // hw_tile)
                           + bsz * hw * 4 + trig.size * 4),
    )

    out = pl.pallas_call(
        kernel,
        out_shape=jax.ShapeDtypeStruct((bsz, hw), jnp.float32),
        grid_spec=pltpu.PrefetchScalarGridSpec(
            num_scalar_prefetch=0,
            grid=(hw // hw_tile, n_angles // tile_a),          # reduction axis last
            in_specs=[
                pl.BlockSpec(memory_space=pltpu.MemorySpace.SMEM),   # cos/sin table
                sf_spec,                                             # filtered sinogram
            ],
            out_specs=pl.BlockSpec((bsz, hw_tile), lambda h, k: (0, h)),   # lane-dense
        ),
        compiler_params=pltpu.CompilerParams(
            dimension_semantics=("parallel", "arbitrary"),
            vmem_limit_bytes=vmem_limit),
        cost_estimate=cost,
    )(jnp.asarray(trig), sf)

    out = out.reshape(bsz, 1, image_size, image_size)
    if circle:
        lin = np.linspace(-1.0, 1.0, image_size)
        gy, gx = np.meshgrid(lin, lin, indexing="ij")
        mask = ((gx ** 2 + gy ** 2) <= 1.0).astype(np.float32)
        out = out * jnp.asarray(mask)[None, None]
    return out


# --------------------------- plain-JAX reference (check) --------------------------
def fbp_reference(x, *, n_angles, image_size, circle=False, filtered=True):
    bsz, _, det_count, _ = x.shape
    x = x.astype(jnp.float32)
    proj_padded = max(64, int(2 ** np.ceil(np.log2(2 * det_count))))
    pad_width = proj_padded - det_count
    if filtered:
        filt = jnp.asarray(_rampfilter(proj_padded), dtype=jnp.float32)
        padded = jnp.pad(x, ((0, 0), (0, 0), (0, pad_width), (0, 0)))
        proj = jnp.fft.fft(padded, axis=2) * filt[None, None, :, None]
        rf = jnp.real(jnp.fft.ifft(proj, axis=2))[:, :, :det_count, :]
    else:
        rf = x
    thetas = np.linspace(0.0, np.pi - np.pi / n_angles, n_angles)
    lin = np.linspace(-1.0, 1.0, image_size)
    gy, gx = np.meshgrid(lin, lin, indexing="ij")
    t = (gx[None] * np.cos(thetas)[:, None, None]
         - gy[None] * np.sin(thetas)[:, None, None])                  # (A, H, W)
    u = ((t + 1.0) * 0.5 * (det_count - 1)).reshape(n_angles, -1)     # (A, HW)
    d = np.arange(det_count, dtype=np.float32)[None, :, None]         # (1, D, 1)
    w = np.maximum(0.0, 1.0 - np.abs(u[:, None, :] - d)).astype(np.float32)  # (A, D, HW)
    step_size = image_size / det_count
    scale = np.pi / (2.0 * n_angles) / step_size
    out = jnp.einsum("adh,bda->bh", jnp.asarray(w), rf[:, 0],
                     precision=lax.Precision.HIGHEST) * scale
    out = out.reshape(bsz, 1, image_size, image_size)
    if circle:
        mask = ((gx ** 2 + gy ** 2) <= 1.0).astype(np.float32)
        out = out * jnp.asarray(mask)[None, None]
    return out


# ------------------------------------- main ----------------------------------------
if __name__ == "__main__":
    bsz = 2
    image_size = 16          # det_count == image_size in the module
    n_angles = 16

    key = jax.random.PRNGKey(0)
    x = jax.random.normal(key, (bsz, 1, image_size, n_angles), dtype=jnp.float32)

    # Small explicit tiles so the test exercises a real (hw_tiles, angle_tiles)=(2,2)
    # grid (accumulation over the arbitrary axis + parallel pixel tiling) and the
    # resident-sinogram + per-angle-accumulation code paths.
    out = fbp_forward(x, n_angles=n_angles, image_size=image_size,
                      circle=False, filtered=True, tile_a=8, hw_tile=128)
    out = jax.block_until_ready(out)

    ref = jax.block_until_ready(
        fbp_reference(x, n_angles=n_angles, image_size=image_size,
                      circle=False, filtered=True))

    err = float(jnp.max(jnp.abs(out - ref)))
    ref_scale = float(jnp.max(jnp.abs(ref))) + 1e-6
    assert out.shape == (bsz, 1, image_size, image_size), out.shape
    # bf16 MXU operands + bf16 hat tail-math => ~1% relative error at this size.
    assert err <= 2.5e-2 * ref_scale, f"mismatch: max|diff|={err}, max|ref|={ref_scale}"

    print("KERNEL_OK")
</pallas_src>

<mosaic_0001>
module attributes {stable_mosaic.version = 11 : i64} {
  func.func @_filter_kernel(%arg0: i32, %arg1: memref<32x16xf32, #tpu.memory_space<vmem>>, %arg2: memref<16x16xf32, #tpu.memory_space<vmem>>, %arg3: memref<32x16xbf16, #tpu.memory_space<vmem>>) attributes {dimension_semantics = [#tpu.dimension_semantics<parallel>], iteration_bounds = array<i64: 1>, scalar_prefetch = 0 : i64, scratch_operands = 0 : i64, tpu.core_type = #tpu.core_type<tc>, window_params = [{transform_indices = @transform_0, window_bounds = array<i64: 32, 16>}, {pipeline_mode = #tpu.pipeline_mode<synchronous>, transform_indices = @transform_1, window_bounds = array<i64: 16, 16>}, {transform_indices = @transform_2, window_bounds = array<i64: 32, 16>}]} {
    %c0 = arith.constant 0 : index
    %c0_0 = arith.constant 0 : index
    %0 = vector.load %arg1[%c0, %c0_0] : memref<32x16xf32, #tpu.memory_space<vmem>>, vector<32x16xf32>
    %c0_1 = arith.constant 0 : index
    %c0_2 = arith.constant 0 : index
    %1 = vector.load %arg2[%c0_1, %c0_2] : memref<16x16xf32, #tpu.memory_space<vmem>>, vector<16x16xf32>
    %cst = arith.constant dense<0.000000e+00> : vector<32x16xf32>
    %2 = tpu.matmul %0, %1, %cst {dimension_numbers = #tpu.dot_dimension_numbers<[1], [0], [0], [1], [0, 0, 1, 1], [], []>} : vector<32x16xf32>, vector<16x16xf32>, vector<32x16xf32> -> vector<32x16xf32>
    %3 = arith.truncf %2 : vector<32x16xf32> to vector<32x16xbf16>
    %c0_3 = arith.constant 0 : index
    %c0_4 = arith.constant 0 : index
    %4 = vector.load %arg3[%c0_3, %c0_4] : memref<32x16xbf16, #tpu.memory_space<vmem>>, vector<32x16xbf16>
    tpu.vector_store %arg3[%c0_3, %c0_4], %3 {strides = array<i32>} : memref<32x16xbf16, #tpu.memory_space<vmem>>, vector<32x16xbf16>,
    return
  }
  func.func @transform_0(%arg0: i32) -> (i32, i32) {
    %c0_i32 = arith.constant 0 : i32
    %c0_i32_0 = arith.constant 0 : i32
    return %arg0, %c0_i32 : i32, i32
  }
  func.func @transform_1(%arg0: i32) -> (i32, i32) {
    %c0_i32 = arith.constant 0 : i32
    %c0_i32_0 = arith.constant 0 : i32
    %c0_i32_1 = arith.constant 0 : i32
    return %c0_i32, %c0_i32_0 : i32, i32
  }
  func.func @transform_2(%arg0: i32) -> (i32, i32) {
    %c0_i32 = arith.constant 0 : i32
    %c0_i32_0 = arith.constant 0 : i32
    return %arg0, %c0_i32 : i32, i32
  }
}

</mosaic_0001>

<bundles_post_ra>
// kernel: tpu_custom_call.1
= control target key start
LH: loop header
LB: loop body
LE: loop exit
PB: predicated region body
PF: predicated region fallthrough
CT: control target
= control target key end

     0   :  { %vm17_vm0 = vcmask 130048   ;;  %vm131_vm1 = vcmask 125952   ;;  %s217_s1 = inlined_call_operand.vmem [shape: f32[16,16], index: 1, kind: input, shape index: {}]   ;;  %s218_s0 = inlined_call_operand.vmem [shape: f32[32,16], index: 0, kind: input, shape index: {}]   ;;  %s219_s2 = inlined_call_operand.vmem [shape: bf16[32,16], index: 2, kind: output, shape index: {}]  }
   0x1   :  { %v16_v0 = vld [vmem:[%s217_s1 + $0x8] sm:$0xff]  ;;  %v15_v1 = vld [vmem:[%s217_s1] sm:$0xff]  ;;  %v13_v3 = vld [vmem:[%s218_s0 + $0x10] sm:$0xff] }
   0x2   :  { %158 = vmatprep.subr.mxu0 %v16_v0  ;;  %168 = vmatprep.subr.mxu1 %v16_v0  ;;  %v11_v2 = vld [vmem:[%s218_s0] sm:$0xff]  ;;  %v12_v4 = vld [vmem:[%s218_s0 + $0x8] sm:$0xff]  ;;  %v14_v5 = vld [vmem:[%s218_s0 + $0x18] sm:$0xff] }
   0x3   :  { %159 = vmatpush3.msra.mxu0 %v16_v0  ;;  %170 = vmatpush3.msra.mxu1 %v16_v0 }
   0x4   :  { %160 = vmatprep.subr.mxu0 %v15_v1  ;;  %169 = vmatprep.subr.mxu1 %v15_v1 }
   0x5   :  { %161 = vmatpush3.msra.mxu0 %v15_v1  ;;  %171 = vmatpush3.msra.mxu1 %v15_v1 }
   0x6   :  { %162 = vmatprep.mubr.msk.f32.mxu0 %vm17_vm0, %v11_v2  ;;  %165 = vmatprep.mubr.msk.f32.mxu1 %vm17_vm0, %v13_v3 }
   0x7   :  { %163 = vmatmul.mubr.msk.f32.vlgmr.msra.gmra.mxu0 %vm17_vm0, %v12_v4  ;;  %166 = vmatmul.mubr.msk.f32.vlgmr.msra.gmra.mxu1 %vm17_vm0, %v14_v5 }
  0xc7   :  { %v164_v6 = vpop.f32.mrf.mxu0  ;;  %v167_v7 = vpop.f32.mrf.mxu1 }
  0xc8   :  { %v149_v8 = vpack.c.bf16 %v164_v6, %v164_v6  ;;  %v151_v9 = vpack.c.bf16 %v167_v7, %v167_v7 }
  0xc9   :  { %v96_v10 = vpop.f32.mrf.mxu0  ;;  %v106_v11 = vpop.f32.mrf.mxu1 }
  0xca   :  { %133 = vst.msk [vmem:[%s219_s2 + $0x4] sm:$0xf] %vm131_vm1, %v149_v8  ;;  %135 = vst.msk [vmem:[%s219_s2 + $0xc] sm:$0xf] %vm131_vm1, %v151_v9  ;;  %v148_v12 = vpack.c.bf16 %v96_v10, %v96_v10  ;;  %v150_v13 = vpack.c.bf16 %v106_v11, %v106_v11 }
  0xcc   :  { %132 = vst.msk [vmem:[%s219_s2] sm:$0xf] %vm131_vm1, %v148_v12  ;;  %134 = vst.msk [vmem:[%s219_s2 + $0x8] sm:$0xf] %vm131_vm1, %v150_v13 }

</bundles_post_ra>
